<compile_context>
chip_gen: v7x
topology: tpu7x:2x2x1
jax: 0.10.0
libtpu: 0.0.40
codegen_flags: <defaults>
</compile_context>

<pallas_src>
import jax
import jax.numpy as jnp
from jax.experimental import pallas as pl
from jax.experimental.pallas import tpu as pltpu


GROUP = 16          # batch rows packed into one 128-lane vector row (16 * 8 features)
LANES = GROUP * 8   # = 128


def _sigmoid(z):
    # Exact sigmoid: exp runs in the EUP slot; the divide is cheap and the
    # kernel is HBM-bound, so there is no need for the approximate reciprocal.
    return 1.0 / (1.0 + jnp.exp(-z))


def _mlp_kernel(x_ref, w1_ref, b1_ref, w2_ref, b2_ref, w3_ref, b3_ref, o_ref):
    # x_ref: (tr, 128) lane-dense tile; each row holds 16 batch rows x 8 features.
    x = x_ref[...].astype(jnp.bfloat16)                                        # (tr, 128)

    z1 = jnp.dot(x, w1_ref[...], preferred_element_type=jnp.float32) + b1_ref[...]
    h1 = _sigmoid(z1).astype(jnp.bfloat16)                                     # (tr, 128)

    z2 = jnp.dot(h1, w2_ref[...], preferred_element_type=jnp.float32) + b2_ref[...]
    h2 = _sigmoid(z2).astype(jnp.bfloat16)                                     # (tr, 128)

    z3 = jnp.dot(h2, w3_ref[...], preferred_element_type=jnp.float32) + b3_ref[...]
    o_ref[...] = _sigmoid(z3).astype(o_ref.dtype)                              # (tr, 16)


def _fold_params(params):
    """Fold the 8->6->4->1 MLP into 128-wide block-diagonal weights (bf16)."""
    w1, b1 = params["w1"], params["b1"]      # (6, 8), (6,)
    w2, b2 = params["w2"], params["b2"]      # (4, 6), (4,)
    w3, b3 = params["w3"], params["b3"]      # (1, 4), (1,)

    eye = jnp.eye(GROUP, dtype=jnp.float32)

    # Layer 1: block[j, m] = W1[m, j]   (pad 6 outputs -> 8 lanes per group)
    blk1 = jnp.pad(w1.T, ((0, 0), (0, 2)))                      # (8, 8)
    w1_big = jnp.kron(eye, blk1).astype(jnp.bfloat16)           # (128, 128)
    b1_big = jnp.tile(jnp.pad(b1, (0, 2)), GROUP)[None, :].astype(jnp.float32)

    # Layer 2: block[m, n] = W2[n, m]   (zero rows kill the padded h1 lanes)
    blk2 = jnp.pad(w2.T, ((0, 2), (0, 4)))                      # (8, 8)
    w2_big = jnp.kron(eye, blk2).astype(jnp.bfloat16)           # (128, 128)
    b2_big = jnp.tile(jnp.pad(b2, (0, 4)), GROUP)[None, :].astype(jnp.float32)

    # Layer 3: selection matrix, W3_sel[8p + n, p] = W3[0, n]
    col3 = jnp.pad(w3[0], (0, 4))[:, None]                      # (8, 1)
    w3_sel = jnp.kron(eye, col3).astype(jnp.bfloat16)           # (128, 16)
    b3_big = jnp.full((1, GROUP), b3[0], jnp.float32)           # (1, 16)

    return w1_big, b1_big, w2_big, b2_big, w3_sel, b3_big


def mlp_forward(x, params, *, block_rows=65536):
    """x: (B, 8) float32 (or bfloat16).  params: PyTorch-shaped weights/biases."""
    B, F = x.shape
    assert F == 8

    w1b, b1b, w2b, b2b, w3s, b3b = _fold_params(params)

    # ---- lane-dense batch packing: (B, 8) -> (R, 128) free row-major view ----
    r_total = pl.cdiv(B, GROUP)             # 128-lane rows needed for B batch rows
    r_total = pl.cdiv(r_total, 8) * 8       # sublane alignment

    # Tile rows per grid step: big enough to amortize per-step overhead, but
    # keep >= 4 roughly equal steps so both v7x TensorCores get work.
    if r_total >= 32:
        tr_cap = max(8, (r_total // 4) // 8 * 8)
    else:
        tr_cap = r_total
    tr = max(8, (min(block_rows // GROUP, tr_cap, r_total) // 8) * 8)

    r_pad = pl.cdiv(r_total, tr) * tr       # every grid block is full (no ragged tile)
    b_pad = r_pad * GROUP

    if b_pad != B:
        x = jnp.pad(x, ((0, b_pad - B), (0, 0)))
    x2d = x.reshape(r_pad, LANES)           # free row-major view

    out = pl.pallas_call(
        _mlp_kernel,
        out_shape=jax.ShapeDtypeStruct((r_pad, GROUP), jnp.float32),
        grid=(r_pad // tr,),
        in_specs=[
            pl.BlockSpec((tr, LANES), lambda i: (i, 0)),        # batch-tiled, lane-dense input
            pl.BlockSpec((LANES, LANES), lambda i: (0, 0)),     # VMEM-resident folded weights
            pl.BlockSpec((1, LANES), lambda i: (0, 0)),
            pl.BlockSpec((LANES, LANES), lambda i: (0, 0)),
            pl.BlockSpec((1, LANES), lambda i: (0, 0)),
            pl.BlockSpec((LANES, GROUP), lambda i: (0, 0)),
            pl.BlockSpec((1, GROUP), lambda i: (0, 0)),
        ],
        out_specs=pl.BlockSpec((tr, GROUP), lambda i: (i, 0)),  # compact 4 B/row output
        compiler_params=pltpu.CompilerParams(
            dimension_semantics=("parallel",),                  # megacore split on v7x
            vmem_limit_bytes=32 * 1024 * 1024,                  # safe on v5e/v6e/v7x
        ),
    )(x2d, w1b, b1b, w2b, b2b, w3s, b3b)

    # (r_pad, 16) row-major == batch order -> (b_pad, 1); drop padding rows.
    return out.reshape(b_pad, 1)[:B]


def init_params(key):
    """Deterministic PyTorch-style init: W, b ~ U(-1/sqrt(fan_in), 1/sqrt(fan_in))."""
    ks = jax.random.split(key, 6)

    def layer(kw, kb, fan_in, fan_out):
        bound = 1.0 / jnp.sqrt(fan_in)
        w = jax.random.uniform(kw, (fan_out, fan_in), jnp.float32, -bound, bound)
        b = jax.random.uniform(kb, (fan_out,), jnp.float32, -bound, bound)
        return w, b

    w1, b1 = layer(ks[0], ks[1], 8, 6)
    w2, b2 = layer(ks[2], ks[3], 6, 4)
    w3, b3 = layer(ks[4], ks[5], 4, 1)
    return {"w1": w1, "b1": b1, "w2": w2, "b2": b2, "w3": w3, "b3": b3}


def reference_forward(x, p):
    h = jax.nn.sigmoid(x @ p["w1"].T + p["b1"])
    h = jax.nn.sigmoid(h @ p["w2"].T + p["b2"])
    return jax.nn.sigmoid(h @ p["w3"].T + p["b3"])


if __name__ == "__main__":
    key = jax.random.PRNGKey(0)
    kx, kp = jax.random.split(key)

    B = 1000                      # non-multiple of 16: exercises padding + 4-step grid
    x = jax.random.normal(kx, (B, 8), dtype=jnp.float32)
    params = init_params(kp)

    y = jax.block_until_ready(mlp_forward(x, params))
    y_ref = reference_forward(x, params)

    assert y.shape == (B, 1)
    max_err = float(jnp.max(jnp.abs(y - y_ref)))
    # bf16 matmul operands + f32 accumulation; outputs are in (0, 1), so a
    # 2e-2 absolute bound is a meaningful correctness check (typical ~1e-3).
    assert max_err < 2e-2, f"max abs err {max_err}"

    print("KERNEL_OK")
</pallas_src>

<mosaic_0001>
module attributes {stable_mosaic.version = 11 : i64} {
  func.func @_mlp_kernel(%arg0: i32, %arg1: memref<16x128xf32, #tpu.memory_space<vmem>>, %arg2: memref<128x128xbf16, #tpu.memory_space<vmem>>, %arg3: memref<1x128xf32, #tpu.memory_space<vmem>>, %arg4: memref<128x128xbf16, #tpu.memory_space<vmem>>, %arg5: memref<1x128xf32, #tpu.memory_space<vmem>>, %arg6: memref<128x16xbf16, #tpu.memory_space<vmem>>, %arg7: memref<1x16xf32, #tpu.memory_space<vmem>>, %arg8: memref<16x16xf32, #tpu.memory_space<vmem>>) attributes {dimension_semantics = [#tpu.dimension_semantics<parallel>], iteration_bounds = array<i64: 4>, scalar_prefetch = 0 : i64, scratch_operands = 0 : i64, tpu.core_type = #tpu.core_type<tc>, window_params = [{transform_indices = @transform_0, window_bounds = array<i64: 16, 128>}, {pipeline_mode = #tpu.pipeline_mode<synchronous>, transform_indices = @transform_1, window_bounds = array<i64: 128, 128>}, {pipeline_mode = #tpu.pipeline_mode<synchronous>, transform_indices = @transform_2, window_bounds = array<i64: 1, 128>}, {pipeline_mode = #tpu.pipeline_mode<synchronous>, transform_indices = @transform_3, window_bounds = array<i64: 128, 128>}, {pipeline_mode = #tpu.pipeline_mode<synchronous>, transform_indices = @transform_4, window_bounds = array<i64: 1, 128>}, {pipeline_mode = #tpu.pipeline_mode<synchronous>, transform_indices = @transform_5, window_bounds = array<i64: 128, 16>}, {pipeline_mode = #tpu.pipeline_mode<synchronous>, transform_indices = @transform_6, window_bounds = array<i64: 1, 16>}, {transform_indices = @transform_7, window_bounds = array<i64: 16, 16>}]} {
    %c0 = arith.constant 0 : index
    %c0_0 = arith.constant 0 : index
    %0 = vector.load %arg1[%c0, %c0_0] : memref<16x128xf32, #tpu.memory_space<vmem>>, vector<16x128xf32>
    %1 = arith.truncf %0 : vector<16x128xf32> to vector<16x128xbf16>
    %c0_1 = arith.constant 0 : index
    %c0_2 = arith.constant 0 : index
    %2 = vector.load %arg2[%c0_1, %c0_2] : memref<128x128xbf16, #tpu.memory_space<vmem>>, vector<128x128xbf16>
    %cst = arith.constant dense<0.000000e+00> : vector<16x128xf32>
    %3 = tpu.matmul %1, %2, %cst {dimension_numbers = #tpu.dot_dimension_numbers<[1], [0], [0], [1], [0, 0, 1, 1], [], []>} : vector<16x128xbf16>, vector<128x128xbf16>, vector<16x128xf32> -> vector<16x128xf32>
    %c0_3 = arith.constant 0 : index
    %c0_4 = arith.constant 0 : index
    %4 = vector.load %arg3[%c0_3, %c0_4] : memref<1x128xf32, #tpu.memory_space<vmem>>, vector<1x128xf32>
    %5 = vector.broadcast %4 : vector<1x128xf32> to vector<16x128xf32>
    %6 = arith.addf %3, %5 : vector<16x128xf32>
    %cst_5 = arith.constant 0.000000e+00 : f32
    %7 = vector.broadcast %cst_5 : f32 to vector<16x128xf32>
    %8 = arith.subf %7, %6 : vector<16x128xf32>
    %9 = math.exp %8 : vector<16x128xf32>
    %cst_6 = arith.constant 1.000000e+00 : f32
    %10 = vector.broadcast %cst_6 : f32 to vector<16x128xf32>
    %11 = arith.addf %10, %9 : vector<16x128xf32>
    %cst_7 = arith.constant 1.000000e+00 : f32
    %12 = vector.broadcast %cst_7 : f32 to vector<16x128xf32>
    %13 = arith.divf %12, %11 : vector<16x128xf32>
    %14 = arith.truncf %13 : vector<16x128xf32> to vector<16x128xbf16>
    %c0_8 = arith.constant 0 : index
    %c0_9 = arith.constant 0 : index
    %15 = vector.load %arg4[%c0_8, %c0_9] : memref<128x128xbf16, #tpu.memory_space<vmem>>, vector<128x128xbf16>
    %cst_10 = arith.constant dense<0.000000e+00> : vector<16x128xf32>
    %16 = tpu.matmul %14, %15, %cst_10 {dimension_numbers = #tpu.dot_dimension_numbers<[1], [0], [0], [1], [0, 0, 1, 1], [], []>} : vector<16x128xbf16>, vector<128x128xbf16>, vector<16x128xf32> -> vector<16x128xf32>
    %c0_11 = arith.constant 0 : index
    %c0_12 = arith.constant 0 : index
    %17 = vector.load %arg5[%c0_11, %c0_12] : memref<1x128xf32, #tpu.memory_space<vmem>>, vector<1x128xf32>
    %18 = vector.broadcast %17 : vector<1x128xf32> to vector<16x128xf32>
    %19 = arith.addf %16, %18 : vector<16x128xf32>
    %cst_13 = arith.constant 0.000000e+00 : f32
    %20 = vector.broadcast %cst_13 : f32 to vector<16x128xf32>
    %21 = arith.subf %20, %19 : vector<16x128xf32>
    %22 = math.exp %21 : vector<16x128xf32>
    %cst_14 = arith.constant 1.000000e+00 : f32
    %23 = vector.broadcast %cst_14 : f32 to vector<16x128xf32>
    %24 = arith.addf %23, %22 : vector<16x128xf32>
    %cst_15 = arith.constant 1.000000e+00 : f32
    %25 = vector.broadcast %cst_15 : f32 to vector<16x128xf32>
    %26 = arith.divf %25, %24 : vector<16x128xf32>
    %27 = arith.truncf %26 : vector<16x128xf32> to vector<16x128xbf16>
    %c0_16 = arith.constant 0 : index
    %c0_17 = arith.constant 0 : index
    %28 = vector.load %arg6[%c0_16, %c0_17] : memref<128x16xbf16, #tpu.memory_space<vmem>>, vector<128x16xbf16>
    %cst_18 = arith.constant dense<0.000000e+00> : vector<16x16xf32>
    %29 = tpu.matmul %27, %28, %cst_18 {dimension_numbers = #tpu.dot_dimension_numbers<[1], [0], [0], [1], [0, 0, 1, 1], [], []>} : vector<16x128xbf16>, vector<128x16xbf16>, vector<16x16xf32> -> vector<16x16xf32>
    %c0_19 = arith.constant 0 : index
    %c0_20 = arith.constant 0 : index
    %30 = vector.load %arg7[%c0_19, %c0_20] : memref<1x16xf32, #tpu.memory_space<vmem>>, vector<1x16xf32>
    %31 = vector.broadcast %30 : vector<1x16xf32> to vector<16x16xf32>
    %32 = arith.addf %29, %31 : vector<16x16xf32>
    %cst_21 = arith.constant 0.000000e+00 : f32
    %33 = vector.broadcast %cst_21 : f32 to vector<16x16xf32>
    %34 = arith.subf %33, %32 : vector<16x16xf32>
    %35 = math.exp %34 : vector<16x16xf32>
    %cst_22 = arith.constant 1.000000e+00 : f32
    %36 = vector.broadcast %cst_22 : f32 to vector<16x16xf32>
    %37 = arith.addf %36, %35 : vector<16x16xf32>
    %cst_23 = arith.constant 1.000000e+00 : f32
    %38 = vector.broadcast %cst_23 : f32 to vector<16x16xf32>
    %39 = arith.divf %38, %37 : vector<16x16xf32>
    %c0_24 = arith.constant 0 : index
    %c0_25 = arith.constant 0 : index
    %40 = vector.load %arg8[%c0_24, %c0_25] : memref<16x16xf32, #tpu.memory_space<vmem>>, vector<16x16xf32>
    tpu.vector_store %arg8[%c0_24, %c0_25], %39 {strides = array<i32>} : memref<16x16xf32, #tpu.memory_space<vmem>>, vector<16x16xf32>,
    return
  }
  func.func @transform_0(%arg0: i32) -> (i32, i32) {
    %c0_i32 = arith.constant 0 : i32
    %c0_i32_0 = arith.constant 0 : i32
    return %arg0, %c0_i32 : i32, i32
  }
  func.func @transform_1(%arg0: i32) -> (i32, i32) {
    %c0_i32 = arith.constant 0 : i32
    %c0_i32_0 = arith.constant 0 : i32
    %c0_i32_1 = arith.constant 0 : i32
    return %c0_i32, %c0_i32_0 : i32, i32
  }
  func.func @transform_2(%arg0: i32) -> (i32, i32) {
    %c0_i32 = arith.constant 0 : i32
    %c0_i32_0 = arith.constant 0 : i32
    %c0_i32_1 = arith.constant 0 : i32
    return %c0_i32, %c0_i32_0 : i32, i32
  }
  func.func @transform_3(%arg0: i32) -> (i32, i32) {
    %c0_i32 = arith.constant 0 : i32
    %c0_i32_0 = arith.constant 0 : i32
    %c0_i32_1 = arith.constant 0 : i32
    return %c0_i32, %c0_i32_0 : i32, i32
  }
  func.func @transform_4(%arg0: i32) -> (i32, i32) {
    %c0_i32 = arith.constant 0 : i32
    %c0_i32_0 = arith.constant 0 : i32
    %c0_i32_1 = arith.constant 0 : i32
    return %c0_i32, %c0_i32_0 : i32, i32
  }
  func.func @transform_5(%arg0: i32) -> (i32, i32) {
    %c0_i32 = arith.constant 0 : i32
    %c0_i32_0 = arith.constant 0 : i32
    %c0_i32_1 = arith.constant 0 : i32
    return %c0_i32, %c0_i32_0 : i32, i32
  }
  func.func @transform_6(%arg0: i32) -> (i32, i32) {
    %c0_i32 = arith.constant 0 : i32
    %c0_i32_0 = arith.constant 0 : i32
    %c0_i32_1 = arith.constant 0 : i32
    return %c0_i32, %c0_i32_0 : i32, i32
  }
  func.func @transform_7(%arg0: i32) -> (i32, i32) {
    %c0_i32 = arith.constant 0 : i32
    %c0_i32_0 = arith.constant 0 : i32
    return %arg0, %c0_i32 : i32, i32
  }
}

</mosaic_0001>

<bundles_post_ra>
// kernel: tpu_custom_call.1
= control target key start
LH: loop header
LB: loop body
LE: loop exit
PB: predicated region body
PF: predicated region fallthrough
CT: control target
= control target key end

     0   :  { %12 = vsyncpa [#allocation3], 0  ;;  %s1265_s0 = inlined_call_operand.vmem [shape: f32[64,128], index: 0, kind: input, shape index: {}]   ;;  %s1266_s1 = inlined_call_operand.hbm [shape: bf16[128,128], index: 1, kind: input, shape index: {}]   ;;  %s1267_s2 = inlined_call_operand.vmem [shape: f32[1,128], index: 2, kind: input, shape index: {}]   ;;  %s1268_s3 = inlined_call_operand.hbm [shape: bf16[128,128], index: 3, kind: input, shape index: {}]   ;;  %s1269_s4 = inlined_call_operand.vmem [shape: f32[1,128], index: 4, kind: input, shape index: {}]   ;;  %s1270_s5 = inlined_call_operand.vmem [shape: bf16[128,16], index: 5, kind: input, shape index: {}]   ;;  %s1271_s6 = inlined_call_operand.vmem [shape: f32[1,16], index: 6, kind: input, shape index: {}]   ;;  %s1272_s7 = inlined_call_operand.vmem [shape: f32[64,16], index: 7, kind: output, shape index: {}]  }
   0x1   :  { %13 = vsyncpa [#allocation5], 0  ;;  %s1099_s24 = smov 0  }
   0x2 LB: > { %s771_s25 = sadd.s32 4294967295, %s1051_s24   ;;  %p773_p0 = scmp.ge.s32.totalorder %s1051_s24, 1  ;;  %s1051_s24 = sphi %s1099_s24, %s19_s24  }
   0x3   : > { %p202_p1 = scmp.lt.s32.totalorder %s1051_s24, 5  ;;  %s1053_s26 = smov [#allocation2]  }
   0x4   : > { %s214_s27 = sshll.u32 %s1053_s26, 4  ;;  %p1113_p3 = scmp.eq.s32.totalorder %s771_s25, 0  ;;  %s215_s27 = int_to_ptr.vmem [resolvable:$true] %s214_s27 }
   0x5   : > { %p1107_p2 = pnand %p773_p0, %p202_p1  ;;  %s1054_s30 = smov [#allocation4]  }
   0x6   : > { %s1277_s29 = scalar_select %p1113_p3, 1, 0 }
   0x7   : > { %s1276_s28 = scalar_select %p1107_p2, 1, 0 }
   0x8   : > { %p908_p4 = pneg %p1107_p2  ;;  %s230_s8 = sshll.u32 %s1054_s30, 4  ;;  %s1125_s8 = int_to_ptr.vmem [resolvable:$true] %s230_s8 }
   0x9   : > { %s981_s12 = scalar_lea.hbm %s1266_s1, 1024 }
   0xa   : > { %p1121_p5 = pnand %p1113_p3, %p908_p4  ;;  %p982_p6 = scmp.ne.s32.totalorder %s1266_s1, %s981_s12 }
   0xb   : > { %p988_p10 = scmp.lt.u32.totalorder %s981_s12, %s1266_s1 }
   0xc   : > { %p983_p7 = pneg %p1121_p5 }
   0xe   : > { %p984_p8 = pnand %p983_p7, %p982_p6 }
  0x10   : > { %p985_p9 = pneg %p984_p8 }
  0x12   : > { %p990_p11 = pnand %p988_p10, %p985_p9 }
  0x14   : > { %993 = shalt.err (!%p990_p11)
}
  0x15   : > { %s994_s17 = scalar_lea.vmem %s215_s27, 1024  ;;  %p1002_p1 = scmp.lt.s32.totalorder %s215_s27, %s215_s27 }
  0x16   : > { %p995_p12 = scmp.ne.s32.totalorder %s215_s27, %s994_s17  ;;  %p1003_p4 = scmp.lt.s32.totalorder %s994_s17, %s994_s17 }
  0x18   : > { %p997_p13 = pnand %p995_p12, %p983_p7  ;;  %p1004_p3 = por %p1003_p4, %p1002_p1 }
  0x1a   : > { %p998_p0 = pneg %p997_p13 }
  0x1c   : > { %p1005_p2 = pnand %p1004_p3, %p998_p0 }
  0x1e   : > { %1008 = shalt.err (!%p1005_p2)
}
  0x1f   : > { %s1055_s18 = smov 64   ;;  %s1056_s19 = smov 4  }
  0x20   : > { %911 = dma.hbm_to_vmem [thread:$0]  (!%p1121_p5), %s1266_s1, 1024, %s215_s27, [#allocation3], %s1055_s18, %s1055_s18, %s1056_s19  }
  0x21   : > { %s1009_s26 = scalar_lea.hbm %s1268_s3, 1024 }
  0x22   : > { %p1010_p6 = scmp.ne.s32.totalorder %s1268_s3, %s1009_s26  ;;  %p1016_p8 = scmp.lt.u32.totalorder %s1009_s26, %s1268_s3 }
  0x24   : > { %p1012_p2 = pnand %p1010_p6, %p983_p7 }
  0x26   : > { %p1013_p3 = pneg %p1012_p2 }
  0x28   : > { %p1018_p9 = pnand %p1016_p8, %p1013_p3 }
  0x2a   : > { %1021 = shalt.err (!%p1018_p9)
}
  0x2b   : > { %s1022_s27 = scalar_lea.vmem %s1125_s8, 1024  ;;  %p1030_p13 = scmp.lt.s32.totalorder %s1125_s8, %s1125_s8 }
  0x2c   : > { %p1023_p10 = scmp.ne.s32.totalorder %s1125_s8, %s1022_s27  ;;  %p1031_p0 = scmp.lt.s32.totalorder %s1022_s27, %s1022_s27 }
  0x2e   : > { %p1025_p11 = pnand %p1023_p10, %p983_p7  ;;  %p1032_p1 = por %p1031_p0, %p1030_p13 }
  0x30   : > { %p1026_p12 = pneg %p1025_p11 }
  0x32   : > { %p1033_p4 = pnand %p1032_p1, %p1026_p12 }
  0x34   : > { %1036 = shalt.err (!%p1033_p4)
}
  0x35   : > { %914 = dma.hbm_to_vmem [thread:$0]  (!%p1121_p5), %s1268_s3, 1024, %s1125_s8, [#allocation5], %s1055_s18, %s1055_s18, %s1056_s19  }
  0x36   : > { %p1279_p6 = scmp.ne.s32.totalorder %s1276_s28, 0 }
  0x37   : > { %p1280_p2 = scmp.ne.s32.totalorder (!%p1279_p6), %s1277_s29, 0 }
  0x38   : > { %264 = sbr.rel (%p1279_p6) target bundleno = 837 (0x345), region = 48 }
  0x3f   : > { %1042 = dma.done.wait (%p1280_p2), [#allocation3], 1024  }
  0x40   : > { %1044 = vsyncadd (%p1280_p2), [#allocation3], 4294966272 }
  0x41   : > { %1046 = dma.done.wait (%p1280_p2), [#allocation5], 1024  }
  0x42   : > { %1048 = vsyncadd (%p1280_p2), [#allocation5], 4294966272  ;;  %v1057_v0 = vmov 0.0   ;;  %vm1058_vm0 = vmmov 0   ;;  %v933_v1 = vld [vmem:[#allocation2] sm:$0xff]   ;;  %s780_s28 = sshll.u32 %s771_s25, 1 }
  0x43   : > { %840 = vmatprep.subr.bf16.mxu0 %v1057_v0  ;;  %856 = vmatprep.mubr.msk.bf16.mxu0 %vm1058_vm0, %v1057_v0  ;;  %v934_v2 = vld [vmem:[#allocation2 + $0x8] sm:$0xff]   ;;  %p301_p5 = scmp.lt.s32.totalorder %s780_s28, 7  ;;  %v935_v3 = vld [vmem:[#allocation2 + $0x10] sm:$0xff]   ;;  %v936_v4 = vld [vmem:[#allocation2 + $0x18] sm:$0xff]   ;;  %vm690_vm1 = vcmask 130048  }
  0x44   : > { %860 = vmatprep.subr.bf16.mxu1 %v1057_v0  ;;  %876 = vmatprep.mubr.msk.bf16.mxu1 %vm1058_vm0, %v1057_v0  ;;  %v937_v5 = vld [vmem:[#allocation2 + $0x20] sm:$0xff]   ;;  %v938_v6 = vld [vmem:[#allocation2 + $0x28] sm:$0xff]   ;;  %v939_v7 = vld [vmem:[#allocation2 + $0x30] sm:$0xff]  }
  0x45   : > { %841 = vmatpush3.bf16.msra.mxu0 %v933_v1  ;;  %s1282_s28 = smov (!%p301_p5, %s780_s28), 7  ;;  %v940_v8 = vld [vmem:[#allocation2 + $0x38] sm:$0xff]   ;;  %v941_v12 = vld [vmem:[#allocation4] sm:$0xff]   ;;  %v942_v13 = vld [vmem:[#allocation4 + $0x8] sm:$0xff]  }
  0x46   : > { %842 = vmatprep.subr.bf16.mxu0 %v1057_v0  ;;  %s781_s25 = sshll.u32 %s1282_s28, 3  ;;  %861 = vmatpush3.bf16.msra.mxu1 %v941_v12  ;;  %v943_v14 = vld [vmem:[#allocation4 + $0x10] sm:$0xff]   ;;  %v944_v15 = vld [vmem:[#allocation4 + $0x18] sm:$0xff]   ;;  %v945_v16 = vld [vmem:[#allocation4 + $0x20] sm:$0xff]  }
  0x47   : > { %s304_s9 = scalar_lea.vmem %s1265_s0, %s781_s25  ;;  %862 = vmatprep.subr.bf16.mxu1 %v1057_v0  ;;  %v946_v17 = vld [vmem:[#allocation4 + $0x28] sm:$0xff]   ;;  %v947_v18 = vld [vmem:[#allocation4 + $0x30] sm:$0xff]   ;;  %v948_v19 = vld [vmem:[#allocation4 + $0x38] sm:$0xff]   ;;  %s310_s19 = scalar_lea.vmem %s1272_s7, %s781_s25 }
  0x48   : > { %v313_v9 = vld [vmem:[%s304_s9] sm:$0xff]  ;;  %v314_v10 = vld [vmem:[%s304_s9 + $0x8] sm:$0xff]  ;;  %v951_v40 = vld [vmem:[%s1270_s5 + $0x10] sm:$0xff]  }
  0x49   : > { %843 = vmatpush3.bf16.msra.mxu0 %v934_v2  ;;  %v315_v11 = vpack.c.bf16 %v314_v10, %v313_v9  ;;  %v784_v20 = vld [vmem:[%s1267_s2] ss:$0 sm:$0xff]  ;;  %v950_v39 = vld [vmem:[%s1270_s5 + $0x8] sm:$0xff]   ;;  %v952_v41 = vld [vmem:[%s1270_s5 + $0x18] sm:$0xff]  }
  0x4a   : > { %844 = vmatprep.subr.bf16.mxu0 %v1057_v0  ;;  %863 = vmatpush3.bf16.msra.mxu1 %v942_v13  ;;  %v949_v38 = vld [vmem:[%s1270_s5] sm:$0xff]   ;;  %v954_v43 = vld [vmem:[%s1270_s5 + $0x28] sm:$0xff]   ;;  %v955_v44 = vld [vmem:[%s1270_s5 + $0x30] sm:$0xff]  }
  0x4b   : > { %864 = vmatprep.subr.bf16.mxu1 %v1057_v0  ;;  %v953_v42 = vld [vmem:[%s1270_s5 + $0x20] sm:$0xff]   ;;  %v956_v45 = vld [vmem:[%s1270_s5 + $0x38] sm:$0xff]  }
  0x4c   : > { %v793_v46 = vld [vmem:[%s1269_s4] ss:$0 sm:$0xff] }
  0x4d   : > { %845 = vmatpush3.bf16.msra.mxu0 %v935_v3 }
  0x4e   : > { %846 = vmatprep.subr.bf16.mxu0 %v1057_v0  ;;  %865 = vmatpush3.bf16.msra.mxu1 %v943_v14 }
  0x4f   : > { %866 = vmatprep.subr.bf16.mxu1 %v1057_v0 }
  0x51   : > { %847 = vmatpush3.bf16.msra.mxu0 %v936_v4 }
  0x52   : > { %848 = vmatprep.subr.bf16.mxu0 %v1057_v0  ;;  %867 = vmatpush3.bf16.msra.mxu1 %v944_v15 }
  0x53   : > { %868 = vmatprep.subr.bf16.mxu1 %v1057_v0 }
  0x55   : > { %849 = vmatpush3.bf16.msra.mxu0 %v937_v5 }
  0x56   : > { %850 = vmatprep.subr.bf16.mxu0 %v1057_v0  ;;  %869 = vmatpush3.bf16.msra.mxu1 %v945_v16 }
  0x57   : > { %870 = vmatprep.subr.bf16.mxu1 %v1057_v0 }
  0x59   : > { %851 = vmatpush3.bf16.msra.mxu0 %v938_v6 }
  0x5a   : > { %852 = vmatprep.subr.bf16.mxu0 %v1057_v0  ;;  %871 = vmatpush3.bf16.msra.mxu1 %v946_v17 }
  0x5b   : > { %872 = vmatprep.subr.bf16.mxu1 %v1057_v0 }
  0x5d   : > { %853 = vmatpush3.bf16.msra.mxu0 %v939_v7 }
  0x5e   : > { %854 = vmatprep.subr.bf16.mxu0 %v1057_v0  ;;  %873 = vmatpush3.bf16.msra.mxu1 %v947_v18 }
  0x5f   : > { %874 = vmatprep.subr.bf16.mxu1 %v1057_v0 }
  0x61   : > { %855 = vmatpush3.bf16.msra.mxu0 %v940_v8 }
  0x62   : > { %880 = vmatprep.subr.bf16.mxu0 %v1057_v0  ;;  %875 = vmatpush3.bf16.msra.mxu1 %v948_v19 }
  0x64   : > { %857 = vmatmul.mubr.bf16.vlgmr.msra.gmra.mrb[0].mxu0 %v315_v11 }
  0x65   : > { %896 = vmatprep.mubr.msk.bf16.mxu0 %vm1058_vm0, %v1057_v0  ;;  %881 = vmatpush3.bf16.msra.mxu0 %v949_v38 }
  0x66   : > { %882 = vmatprep.subr.bf16.mxu0 %v1057_v0 }
  0x69   : > { %883 = vmatpush3.bf16.msra.mxu0 %v950_v39 }
  0x6a   : > { %884 = vmatprep.subr.bf16.mxu0 %v1057_v0 }
  0x6d   : > { %885 = vmatpush3.bf16.msra.mxu0 %v951_v40 }
  0x6e   : > { %886 = vmatprep.subr.bf16.mxu0 %v1057_v0 }
  0x71   : > { %887 = vmatpush3.bf16.msra.mxu0 %v952_v41 }
  0x72   : > { %888 = vmatprep.subr.bf16.mxu0 %v1057_v0 }
  0x75   : > { %889 = vmatpush3.bf16.msra.mxu0 %v953_v42 }
  0x76   : > { %890 = vmatprep.subr.bf16.mxu0 %v1057_v0 }
  0x79   : > { %891 = vmatpush3.bf16.msra.mxu0 %v954_v43 }
  0x7a   : > { %892 = vmatprep.subr.bf16.mxu0 %v1057_v0 }
  0x7d   : > { %893 = vmatpush3.bf16.msra.mxu0 %v955_v44 }
  0x7e   : > { %894 = vmatprep.subr.bf16.mxu0 %v1057_v0  ;;  %v802_v0 = vld [vmem:[%s1271_s6] ss:$0 sm:$0xff] }
  0x81   : > { %895 = vmatpush3.bf16.msra.mxu0 %v956_v45 }
 0x137   : > { %v421_v21 = vpop.f32.mrb[0].mxu0 }
 0x138   : > { %v422_v22 = vadd.f32 %v784_v20, %v421_v21  ;;  %v858_v23 = vpop.f32.mrb[1].mxu0 }
 0x139   : > { %v424_v24 = vpop.f32.mrb[2].mxu0 }
 0x13a   : > { %v428_v25 = vsub.f32 0.0, %v422_v22  ;;  %v425_v26 = vadd.f32 %v784_v20, %v424_v24  ;;  %v859_v27 = vpop.f32.mrb[3].mxu0 }
 0x13c   : > { %v430_v28 = vmul.f32 1.442695, %v428_v25  ;;  %v429_v29 = vsub.f32 0.0, %v425_v26 }
 0x13e   : > { %957 = vpow2.f32 %v430_v28  ;;  %v432_v30 = vmul.f32 1.442695, %v429_v29 }
 0x140   : > { %959 = vpow2.f32 %v432_v30 }
 0x148   : > { %v958_v31 = vpop.eup %957 }
 0x149   : > { %v434_v32 = vadd.f32 1.0, %v958_v31 }
 0x14a   : > { %v960_v33 = vpop.eup %959 }
 0x14b   : > { %v435_v34 = vadd.f32 1.0, %v960_v33  ;;  %961 = vrcp.f32 %v434_v32 }
 0x14d   : > { %963 = vrcp.f32 %v435_v34 }
 0x155   : > { %v962_v35 = vpop.eup %961 }
 0x157   : > { %v964_v36 = vpop.eup %963 }
 0x158   : > { %v440_v37 = vpack.c.bf16 %v964_v36, %v962_v35 }
 0x15a   : > { %877 = vmatmul.mubr.bf16.vlgmr.msra.gmra.mrb[0].mxu1 %v440_v37 }
 0x22d   : > { %v546_v47 = vpop.f32.mrb[0].mxu1 }
 0x22e   : > { %v547_v48 = vadd.f32 %v793_v46, %v546_v47  ;;  %v878_v49 = vpop.f32.mrb[1].mxu1 }
 0x22f   : > { %v549_v50 = vpop.f32.mrb[2].mxu1 }
 0x230   : > { %v553_v51 = vsub.f32 0.0, %v547_v48  ;;  %v550_v52 = vadd.f32 %v793_v46, %v549_v50  ;;  %v879_v53 = vpop.f32.mrb[3].mxu1 }
 0x232   : > { %v555_v54 = vmul.f32 1.442695, %v553_v51  ;;  %v554_v55 = vsub.f32 0.0, %v550_v52 }
 0x234   : > { %965 = vpow2.f32 %v555_v54  ;;  %v557_v56 = vmul.f32 1.442695, %v554_v55 }
 0x236   : > { %967 = vpow2.f32 %v557_v56 }
 0x23e   : > { %v966_v57 = vpop.eup %965 }
 0x23f   : > { %v559_v58 = vadd.f32 1.0, %v966_v57 }
 0x240   : > { %v968_v59 = vpop.eup %967 }
 0x241   : > { %v560_v60 = vadd.f32 1.0, %v968_v59  ;;  %969 = vrcp.f32 %v559_v58 }
 0x243   : > { %971 = vrcp.f32 %v560_v60 }
 0x24b   : > { %v970_v61 = vpop.eup %969 }
 0x24d   : > { %v972_v62 = vpop.eup %971 }
 0x24e   : > { %v565_v63 = vpack.c.bf16 %v972_v62, %v970_v61 }
 0x250   : > { %897 = vmatmul.mubr.bf16.vlgmr.msra.gmra.mrb[4].mxu0 %v565_v63 }
 0x323   : > { %v671_v1 = vpop.f32.mrb[4].mxu0 }
 0x324   : > { %v672_v2 = vadd.f32 %v802_v0, %v671_v1  ;;  %v898_v3 = vpop.f32.mrb[5].mxu0 }
 0x325   : > { %v674_v4 = vpop.f32.mrb[6].mxu0 }
 0x326   : > { %v678_v5 = vsub.f32 0.0, %v672_v2  ;;  %v675_v6 = vadd.f32 %v802_v0, %v674_v4  ;;  %v899_v7 = vpop.f32.mrb[7].mxu0 }
 0x328   : > { %v680_v8 = vmul.f32 1.442695, %v678_v5  ;;  %v679_v9 = vsub.f32 0.0, %v675_v6 }
 0x32a   : > { %973 = vpow2.f32 %v680_v8  ;;  %v682_v10 = vmul.f32 1.442695, %v679_v9 }
 0x32c   : > { %975 = vpow2.f32 %v682_v10 }
 0x334   : > { %v974_v11 = vpop.eup %973 }
 0x335   : > { %v684_v12 = vadd.f32 1.0, %v974_v11 }
 0x336   : > { %v976_v13 = vpop.eup %975 }
 0x337   : > { %977 = vrcp.f32 %v684_v12  ;;  %v685_v14 = vadd.f32 1.0, %v976_v13 }
 0x339   : > { %979 = vrcp.f32 %v685_v14 }
 0x341   : > { %v978_v15 = vpop.eup %977 }
 0x342   : > { %691 = vst.msk [vmem:[%s310_s19] sm:$0xff] %vm690_vm1, %v978_v15 }
 0x343   : > { %v980_v16 = vpop.eup %979 }
 0x344   : > { %692 = vst.msk [vmem:[%s310_s19 + $0x8] sm:$0xff] %vm690_vm1, %v980_v16 }
 0x345 PF: > { %s19_s24 = sadd.s32 1, %s1051_s24  }
 0x346   : > { %p16_p7 = scmp.ge.s32.totalorder %s19_s24, 6  }
 0x348   :  { %18 = sbr.rel (!%p16_p7) target bundleno = 2 (0x2), region = 87 }
 0x34f   :  { %715 = vsyncpa [#allocation3], 1 }
 0x350   :  { %717 = vsyncpa [#allocation3 + $0x1], 1 }
 0x351   :  { %718 = vsyncpa [#allocation5], 1 }

</bundles_post_ra>
